<compile_context>
chip_gen: v5e
topology: v5e:2x2
jax: 0.10.0
libtpu: 0.0.40
codegen_flags: <defaults>
</compile_context>

<pallas_src>
import functools

import jax
import jax.numpy as jnp
from jax.experimental import pallas as pl
from jax.experimental.pallas import tpu as pltpu


# ---------------------------------------------------------------------------
# In-kernel helpers (shared by the three kernels).
# ---------------------------------------------------------------------------

def _conv_rows(x_ref, w_ref, b_ref):
    """3x3 / pad=1 conv of one lane-dense image.

    x_ref: (H, W*Cin)   w_ref: (3, W*Cin, W*Cout) band weights   b_ref: (1, W*Cout)
    Returns the conv(+bias) output (H, W*Cout) in float32.
    """
    H = x_ref.shape[0]
    WCo = w_ref.shape[-1]
    x2 = x_ref[...].astype(jnp.float32)
    # One matmul per kernel row; width padding is already folded into the band
    # weights, height padding is handled by the row shifts below.
    z_top = jnp.dot(x2, w_ref[0], preferred_element_type=jnp.float32)  # uses row h-1
    z_mid = jnp.dot(x2, w_ref[1], preferred_element_type=jnp.float32)  # uses row h
    z_bot = jnp.dot(x2, w_ref[2], preferred_element_type=jnp.float32)  # uses row h+1
    zrow = jnp.zeros((1, WCo), jnp.float32)
    acc = z_mid
    acc = acc + jnp.concatenate([zrow, z_top[:H - 1, :]], axis=0)
    acc = acc + jnp.concatenate([z_bot[1:, :], zrow], axis=0)
    return acc + b_ref[...]


def _lrelu_pool(z, sel_ref):
    """LeakyReLU(0.01) + MaxPool2d(2) on a lane-dense (H, W*C) image."""
    H, WC = z.shape
    z = jnp.where(z > 0, z, 0.01 * z)
    # Row pairs: reshape + max (no strided sublane slices).
    zr = jnp.max(z.reshape(H // 2, 2, WC), axis=1)                      # (H/2, W*C)
    # Column pairs: exact 0/1 selection matmuls keep the output lane-dense.
    even = jnp.dot(zr, sel_ref[0], preferred_element_type=jnp.float32)
    odd = jnp.dot(zr, sel_ref[1], preferred_element_type=jnp.float32)
    return jnp.maximum(even, odd)                                        # (H/2, (W/2)*C)


# ---------------------------------------------------------------------------
# Kernels.
# ---------------------------------------------------------------------------

def _conv_stats_kernel(x_ref, w_ref, b_ref, y_ref, sum_ref, ssq_ref):
    """Training pass 1: conv(+bias) output plus per-lane BN statistics."""
    acc = _conv_rows(x_ref, w_ref, b_ref)              # (H, W*Cout) f32
    y_ref[...] = acc.astype(y_ref.dtype)

    @pl.when(pl.program_id(0) == 0)
    def _init():
        sum_ref[...] = jnp.zeros_like(sum_ref)
        ssq_ref[...] = jnp.zeros_like(ssq_ref)

    # Accumulated across the (arbitrary) batch grid axis; the wrapper reduces
    # over W and divides by N*H*W.
    sum_ref[...] += jnp.sum(acc, axis=0, keepdims=True)
    ssq_ref[...] += jnp.sum(acc * acc, axis=0, keepdims=True)


def _bn_lrelu_pool_kernel(y_ref, scale_ref, bias_ref, sel_ref, o_ref):
    """Training pass 2: BN affine + LeakyReLU + 2x2 max-pool."""
    z = y_ref[...].astype(jnp.float32) * scale_ref[...] + bias_ref[...]
    o_ref[...] = _lrelu_pool(z, sel_ref).astype(o_ref.dtype)


def _fused_kernel(x_ref, w_ref, b_ref, sel_ref, o_ref):
    """Eval: conv (BN folded into weights/bias) + LeakyReLU + pool, one pass."""
    acc = _conv_rows(x_ref, w_ref, b_ref)
    o_ref[...] = _lrelu_pool(acc, sel_ref).astype(o_ref.dtype)


# ---------------------------------------------------------------------------
# Constant-builders (wrapper side, tiny tensors).
# ---------------------------------------------------------------------------

def _build_band_weights(conv_w, W):
    """(Cout, Cin, 3, 3) torch weight -> (3, W*Cin, W*Cout) band matrices.

    band[dh, w_in*Cin + ci, w_out*Cout + co] = w[co, ci, dh, w_in - w_out + 1]
    (zero outside |w_in - w_out| <= 1, which realizes the width zero-padding).
    """
    Cin, Cout = conv_w.shape[1], conv_w.shape[0]
    w_hw = jnp.transpose(conv_w, (2, 3, 1, 0))                  # (dh, dw, Cin, Cout)
    dw = jnp.arange(W)[:, None] - jnp.arange(W)[None, :] + 1    # (w_in, w_out)
    valid = (dw >= 0) & (dw <= 2)
    blocks = w_hw[:, jnp.clip(dw, 0, 2), :, :]                  # (3, W, W, Cin, Cout)
    blocks = jnp.where(valid[None, :, :, None, None], blocks, 0.0)
    return blocks.transpose(0, 1, 3, 2, 4).reshape(3, W * Cin, W * Cout)


def _build_pool_selectors(W, C):
    """0/1 matrices selecting even / odd width positions of a (., W*C) image."""
    in_w = jnp.arange(W * C) // C
    in_c = jnp.arange(W * C) % C
    out_w = jnp.arange((W // 2) * C) // C
    out_c = jnp.arange((W // 2) * C) % C
    same_c = in_c[:, None] == out_c[None, :]
    s_even = (in_w[:, None] == 2 * out_w[None, :]) & same_c
    s_odd = (in_w[:, None] == 2 * out_w[None, :] + 1) & same_c
    return jnp.stack([s_even, s_odd], axis=0).astype(jnp.float32)


# ---------------------------------------------------------------------------
# pallas_call wrappers.
# ---------------------------------------------------------------------------

def _conv_stats_call(x2, w_band, b_tiled):
    N, H, WCi = x2.shape
    WCo = w_band.shape[-1]
    return pl.pallas_call(
        _conv_stats_kernel,
        out_shape=(
            jax.ShapeDtypeStruct((N, H, WCo), jnp.float32),   # conv output (lane-dense)
            jax.ShapeDtypeStruct((1, WCo), jnp.float32),      # sum over (N, H)
            jax.ShapeDtypeStruct((1, WCo), jnp.float32),      # sum of squares over (N, H)
        ),
        grid=(N,),
        in_specs=[
            pl.BlockSpec((None, H, WCi), lambda n: (n, 0, 0)),
            pl.BlockSpec((3, WCi, WCo), lambda n: (0, 0, 0)),
            pl.BlockSpec((1, WCo), lambda n: (0, 0)),
        ],
        out_specs=(
            pl.BlockSpec((None, H, WCo), lambda n: (n, 0, 0)),
            pl.BlockSpec((1, WCo), lambda n: (0, 0)),
            pl.BlockSpec((1, WCo), lambda n: (0, 0)),
        ),
        # Batch axis is a reduction for the stats accumulators.
        compiler_params=pltpu.CompilerParams(dimension_semantics=("arbitrary",)),
    )(x2, w_band, b_tiled)


def _bn_lrelu_pool_call(y, scale_t, bias_t, sel):
    N, H, WCo = y.shape
    W2Co = sel.shape[-1]
    return pl.pallas_call(
        _bn_lrelu_pool_kernel,
        out_shape=jax.ShapeDtypeStruct((N, H // 2, W2Co), jnp.float32),
        grid=(N,),
        in_specs=[
            pl.BlockSpec((None, H, WCo), lambda n: (n, 0, 0)),
            pl.BlockSpec((1, WCo), lambda n: (0, 0)),
            pl.BlockSpec((1, WCo), lambda n: (0, 0)),
            pl.BlockSpec(sel.shape, lambda n: (0, 0, 0)),
        ],
        out_specs=pl.BlockSpec((None, H // 2, W2Co), lambda n: (n, 0, 0)),
        compiler_params=pltpu.CompilerParams(dimension_semantics=("parallel",)),
    )(y, scale_t, bias_t, sel)


def _fused_call(x2, w_f, b_f, sel):
    N, H, _ = x2.shape
    WCo = w_f.shape[-1]
    W2Co = sel.shape[-1]
    return pl.pallas_call(
        _fused_kernel,
        out_shape=jax.ShapeDtypeStruct((N, H // 2, W2Co), jnp.float32),
        grid=(N,),
        in_specs=[
            pl.BlockSpec((None, H, x2.shape[-1]), lambda n: (n, 0, 0)),
            pl.BlockSpec(w_f.shape, lambda n: (0, 0, 0)),
            pl.BlockSpec((1, WCo), lambda n: (0, 0)),
            pl.BlockSpec(sel.shape, lambda n: (0, 0, 0)),
        ],
        out_specs=pl.BlockSpec((None, H // 2, W2Co), lambda n: (n, 0, 0)),
        compiler_params=pltpu.CompilerParams(dimension_semantics=("parallel",)),
    )(x2, w_f, b_f, sel)


# ---------------------------------------------------------------------------
# Public forward.
# ---------------------------------------------------------------------------

def down_forward(x_nchw, params, *, eps=1e-5, training=True):
    """Equivalent of Down.forward(x) for an NCHW float32 input (returns NCHW)."""
    N, Cin, H, W = x_nchw.shape
    Cout = params["conv_w"].shape[0]

    # NCHW -> lane-dense (N, H, W*Cin); single pass over the (small) input.
    x2 = jnp.transpose(x_nchw, (0, 2, 3, 1)).reshape(N, H, W * Cin)
    w_band = _build_band_weights(params["conv_w"], W)           # (3, W*Cin, W*Cout)
    sel = _build_pool_selectors(W, Cout)                        # (2, W*Cout, (W/2)*Cout)

    if training:
        b_tiled = jnp.tile(params["conv_b"], W)[None, :]
        y, psum, pssq = _conv_stats_call(x2, w_band, b_tiled)
        cnt = N * H * W
        mean = psum.reshape(W, Cout).sum(axis=0) / cnt
        # Biased batch variance (PyTorch training-mode normalization).
        # TODO(synk): one-pass E[x^2]-E[x]^2 in f32; use a two-pass/Welford form
        #   if activation magnitudes ever make cancellation an issue.
        var = pssq.reshape(W, Cout).sum(axis=0) / cnt - mean * mean
        var = jnp.maximum(var, 0.0)
        scale = params["bn_gamma"] * jax.lax.rsqrt(var + eps)
        bias = params["bn_beta"] - mean * scale
        o = _bn_lrelu_pool_call(y, jnp.tile(scale, W)[None, :],
                                jnp.tile(bias, W)[None, :], sel)
        # TODO(synk): running-stat (momentum) updates are module state and are
        #   not reproduced; they do not affect the forward output.
    else:
        scale = params["bn_gamma"] * jax.lax.rsqrt(params["bn_running_var"] + eps)
        bias = params["bn_beta"] - params["bn_running_mean"] * scale
        # Fold BN into the conv (w' = w*scale, b' = conv_b*scale + bias) and run
        # one fully fused kernel -> conv output never round-trips HBM.
        w_f = w_band * jnp.tile(scale, W)[None, None, :]
        b_f = jnp.tile(params["conv_b"] * scale + bias, W)[None, :]
        o = _fused_call(x2, w_f, b_f, sel)

    o = o.reshape(N, H // 2, W // 2, Cout)
    return jnp.transpose(o, (0, 3, 1, 2))                       # -> NCHW


# ---------------------------------------------------------------------------
# Pure-JAX reference (numerical validation only).
# ---------------------------------------------------------------------------

def _reference(x, params, *, eps=1e-5, training=True):
    y = jax.lax.conv_general_dilated(
        x, params["conv_w"], window_strides=(1, 1), padding=((1, 1), (1, 1)),
        dimension_numbers=("NCHW", "OIHW", "NCHW"),
        precision=jax.lax.Precision.HIGHEST)
    y = y + params["conv_b"][None, :, None, None]
    if training:
        mean = jnp.mean(y, axis=(0, 2, 3))
        var = jnp.mean(jnp.square(y - mean[None, :, None, None]), axis=(0, 2, 3))
    else:
        mean, var = params["bn_running_mean"], params["bn_running_var"]
    z = (y - mean[None, :, None, None]) * jax.lax.rsqrt(var[None, :, None, None] + eps)
    z = z * params["bn_gamma"][None, :, None, None] + params["bn_beta"][None, :, None, None]
    z = jnp.where(z > 0, z, 0.01 * z)
    return jax.lax.reduce_window(z, -jnp.inf, jax.lax.max,
                                 (1, 1, 2, 2), (1, 1, 2, 2), "VALID")


if __name__ == "__main__":
    N, Cin, Cout, H, W = 2, 4, 8, 16, 16
    key = jax.random.PRNGKey(0)
    kx, kw, kb = jax.random.split(key, 3)

    x = jax.random.normal(kx, (N, Cin, H, W), jnp.float32)

    fan_in = Cin * 3 * 3
    bound = float(1.0 / fan_in ** 0.5)
    params = {
        "conv_w": jax.random.uniform(kw, (Cout, Cin, 3, 3), jnp.float32, -bound, bound),
        "conv_b": jax.random.uniform(kb, (Cout,), jnp.float32, -bound, bound),
        "bn_gamma": jnp.ones((Cout,), jnp.float32),
        "bn_beta": jnp.zeros((Cout,), jnp.float32),
        "bn_running_mean": jnp.zeros((Cout,), jnp.float32),
        "bn_running_var": jnp.ones((Cout,), jnp.float32),
    }

    train_fwd = jax.jit(functools.partial(down_forward, training=True))
    eval_fwd = jax.jit(functools.partial(down_forward, training=False))

    out_train = jax.block_until_ready(train_fwd(x, params))
    out_eval = jax.block_until_ready(eval_fwd(x, params))

    assert out_train.shape == (N, Cout, H // 2, W // 2), out_train.shape
    assert out_eval.shape == (N, Cout, H // 2, W // 2), out_eval.shape
    assert out_train.dtype == jnp.float32

    ref_train = _reference(x, params, training=True)
    ref_eval = _reference(x, params, training=False)
    assert jnp.allclose(out_train, ref_train, rtol=2e-2, atol=2e-2), \
        float(jnp.max(jnp.abs(out_train - ref_train)))
    assert jnp.allclose(out_eval, ref_eval, rtol=2e-2, atol=2e-2), \
        float(jnp.max(jnp.abs(out_eval - ref_eval)))

    print("KERNEL_OK")
</pallas_src>

<mosaic_0001>
module attributes {stable_mosaic.version = 11 : i64} {
  func.func @_conv_stats_kernel(%arg0: i32, %arg1: memref<1x16x64xf32, #tpu.memory_space<vmem>>, %arg2: memref<3x64x128xf32, #tpu.memory_space<vmem>>, %arg3: memref<1x128xf32, #tpu.memory_space<vmem>>, %arg4: memref<1x16x128xf32, #tpu.memory_space<vmem>>, %arg5: memref<1x128xf32, #tpu.memory_space<vmem>>, %arg6: memref<1x128xf32, #tpu.memory_space<vmem>>) attributes {dimension_semantics = [#tpu.dimension_semantics<arbitrary>], iteration_bounds = array<i64: 2>, scalar_prefetch = 0 : i64, scratch_operands = 0 : i64, tpu.core_type = #tpu.core_type<tc>, window_params = [{transform_indices = @transform_0, window_bounds = array<i64: 1, 16, 64>}, {pipeline_mode = #tpu.pipeline_mode<synchronous>, transform_indices = @transform_1, window_bounds = array<i64: 3, 64, 128>}, {pipeline_mode = #tpu.pipeline_mode<synchronous>, transform_indices = @transform_2, window_bounds = array<i64: 1, 128>}, {transform_indices = @transform_3, window_bounds = array<i64: 1, 16, 128>}, {pipeline_mode = #tpu.pipeline_mode<synchronous>, transform_indices = @transform_4, window_bounds = array<i64: 1, 128>}, {pipeline_mode = #tpu.pipeline_mode<synchronous>, transform_indices = @transform_5, window_bounds = array<i64: 1, 128>}]} {
    %c0 = arith.constant 0 : index
    %c0_0 = arith.constant 0 : index
    %c0_1 = arith.constant 0 : index
    %0 = vector.load %arg1[%c0, %c0_0, %c0_1] : memref<1x16x64xf32, #tpu.memory_space<vmem>>, vector<1x16x64xf32>
    %1 = vector.shape_cast %0 : vector<1x16x64xf32> to vector<16x64xf32>
    %c0_2 = arith.constant 0 : index
    %c0_3 = arith.constant 0 : index
    %c0_4 = arith.constant 0 : index
    %2 = vector.load %arg2[%c0_2, %c0_3, %c0_4] : memref<3x64x128xf32, #tpu.memory_space<vmem>>, vector<1x64x128xf32>
    %3 = vector.shape_cast %2 : vector<1x64x128xf32> to vector<64x128xf32>
    %cst = arith.constant dense<0.000000e+00> : vector<16x128xf32>
    %4 = tpu.matmul %1, %3, %cst {dimension_numbers = #tpu.dot_dimension_numbers<[1], [0], [0], [1], [0, 0, 1, 1], [], []>} : vector<16x64xf32>, vector<64x128xf32>, vector<16x128xf32> -> vector<16x128xf32>
    %c1 = arith.constant 1 : index
    %c0_5 = arith.constant 0 : index
    %c0_6 = arith.constant 0 : index
    %5 = vector.load %arg2[%c1, %c0_5, %c0_6] : memref<3x64x128xf32, #tpu.memory_space<vmem>>, vector<1x64x128xf32>
    %6 = vector.shape_cast %5 : vector<1x64x128xf32> to vector<64x128xf32>
    %cst_7 = arith.constant dense<0.000000e+00> : vector<16x128xf32>
    %7 = tpu.matmul %1, %6, %cst_7 {dimension_numbers = #tpu.dot_dimension_numbers<[1], [0], [0], [1], [0, 0, 1, 1], [], []>} : vector<16x64xf32>, vector<64x128xf32>, vector<16x128xf32> -> vector<16x128xf32>
    %c2 = arith.constant 2 : index
    %c0_8 = arith.constant 0 : index
    %c0_9 = arith.constant 0 : index
    %8 = vector.load %arg2[%c2, %c0_8, %c0_9] : memref<3x64x128xf32, #tpu.memory_space<vmem>>, vector<1x64x128xf32>
    %9 = vector.shape_cast %8 : vector<1x64x128xf32> to vector<64x128xf32>
    %cst_10 = arith.constant dense<0.000000e+00> : vector<16x128xf32>
    %10 = tpu.matmul %1, %9, %cst_10 {dimension_numbers = #tpu.dot_dimension_numbers<[1], [0], [0], [1], [0, 0, 1, 1], [], []>} : vector<16x64xf32>, vector<64x128xf32>, vector<16x128xf32> -> vector<16x128xf32>
    %cst_11 = arith.constant 0.000000e+00 : f32
    %11 = vector.broadcast %cst_11 : f32 to vector<1x128xf32>
    %12 = vector.extract_strided_slice %4 {offsets = [0, 0], sizes = [15, 128], strides = [1, 1]} : vector<16x128xf32> to vector<15x128xf32>
    %13 = tpu.concatenate %11, %12 in 0 : vector<1x128xf32>, vector<15x128xf32> -> vector<16x128xf32>
    %14 = arith.addf %7, %13 : vector<16x128xf32>
    %15 = vector.extract_strided_slice %10 {offsets = [1, 0], sizes = [15, 128], strides = [1, 1]} : vector<16x128xf32> to vector<15x128xf32>
    %16 = tpu.concatenate %15, %11 in 0 : vector<15x128xf32>, vector<1x128xf32> -> vector<16x128xf32>
    %17 = arith.addf %14, %16 : vector<16x128xf32>
    %c0_12 = arith.constant 0 : index
    %c0_13 = arith.constant 0 : index
    %18 = vector.load %arg3[%c0_12, %c0_13] : memref<1x128xf32, #tpu.memory_space<vmem>>, vector<1x128xf32>
    %19 = vector.broadcast %18 : vector<1x128xf32> to vector<16x128xf32>
    %20 = arith.addf %17, %19 : vector<16x128xf32>
    %c0_14 = arith.constant 0 : index
    %c0_15 = arith.constant 0 : index
    %c0_16 = arith.constant 0 : index
    %21 = vector.load %arg4[%c0_14, %c0_15, %c0_16] : memref<1x16x128xf32, #tpu.memory_space<vmem>>, vector<1x16x128xf32>
    %22 = vector.shape_cast %21 : vector<1x16x128xf32> to vector<16x128xf32>
    %23 = vector.shape_cast %20 : vector<16x128xf32> to vector<1x16x128xf32>
    tpu.vector_store %arg4[%c0_14, %c0_15, %c0_16], %23 {strides = array<i32>} : memref<1x16x128xf32, #tpu.memory_space<vmem>>, vector<1x16x128xf32>,
    %c0_i32 = arith.constant 0 : i32
    %24 = arith.cmpi eq, %arg0, %c0_i32 : i32
    %25 = arith.extui %24 : i1 to i32
    %c0_i32_17 = arith.constant 0 : i32
    %26 = arith.cmpi ne, %25, %c0_i32_17 : i32
    scf.if %26 {
      %cst_28 = arith.constant 0.000000e+00 : f32
      %38 = vector.broadcast %cst_28 : f32 to vector<1x128xf32>
      %c0_29 = arith.constant 0 : index
      %c0_30 = arith.constant 0 : index
      %39 = vector.load %arg5[%c0_29, %c0_30] : memref<1x128xf32, #tpu.memory_space<vmem>>, vector<1x128xf32>
      tpu.vector_store %arg5[%c0_29, %c0_30], %38 {strides = array<i32>} : memref<1x128xf32, #tpu.memory_space<vmem>>, vector<1x128xf32>,
      %cst_31 = arith.constant 0.000000e+00 : f32
      %40 = vector.broadcast %cst_31 : f32 to vector<1x128xf32>
      %c0_32 = arith.constant 0 : index
      %c0_33 = arith.constant 0 : index
      %41 = vector.load %arg6[%c0_32, %c0_33] : memref<1x128xf32, #tpu.memory_space<vmem>>, vector<1x128xf32>
      tpu.vector_store %arg6[%c0_32, %c0_33], %40 {strides = array<i32>} : memref<1x128xf32, #tpu.memory_space<vmem>>, vector<1x128xf32>,
    } else {
    }
    %c0_18 = arith.constant 0 : index
    %c0_19 = arith.constant 0 : index
    %27 = vector.load %arg5[%c0_18, %c0_19] : memref<1x128xf32, #tpu.memory_space<vmem>>, vector<1x128xf32>
    %cst_20 = arith.constant dense<0.000000e+00> : vector<128xf32>
    %28 = vector.multi_reduction <add>, %20, %cst_20 [0] : vector<16x128xf32> to vector<128xf32>
    %29 = vector.shape_cast %28 : vector<128xf32> to vector<1x128xf32>
    %30 = arith.addf %27, %29 : vector<1x128xf32>
    %c0_21 = arith.constant 0 : index
    %c0_22 = arith.constant 0 : index
    %31 = vector.load %arg5[%c0_21, %c0_22] : memref<1x128xf32, #tpu.memory_space<vmem>>, vector<1x128xf32>
    tpu.vector_store %arg5[%c0_21, %c0_22], %30 {strides = array<i32>} : memref<1x128xf32, #tpu.memory_space<vmem>>, vector<1x128xf32>,
    %c0_23 = arith.constant 0 : index
    %c0_24 = arith.constant 0 : index
    %32 = vector.load %arg6[%c0_23, %c0_24] : memref<1x128xf32, #tpu.memory_space<vmem>>, vector<1x128xf32>
    %33 = arith.mulf %20, %20 : vector<16x128xf32>
    %cst_25 = arith.constant dense<0.000000e+00> : vector<128xf32>
    %34 = vector.multi_reduction <add>, %33, %cst_25 [0] : vector<16x128xf32> to vector<128xf32>
    %35 = vector.shape_cast %34 : vector<128xf32> to vector<1x128xf32>
    %36 = arith.addf %32, %35 : vector<1x128xf32>
    %c0_26 = arith.constant 0 : index
    %c0_27 = arith.constant 0 : index
    %37 = vector.load %arg6[%c0_26, %c0_27] : memref<1x128xf32, #tpu.memory_space<vmem>>, vector<1x128xf32>
    tpu.vector_store %arg6[%c0_26, %c0_27], %36 {strides = array<i32>} : memref<1x128xf32, #tpu.memory_space<vmem>>, vector<1x128xf32>,
    return
  }
  func.func @transform_0(%arg0: i32) -> (i32, i32, i32) {
    %c0_i32 = arith.constant 0 : i32
    %c0_i32_0 = arith.constant 0 : i32
    %c0_i32_1 = arith.constant 0 : i32
    return %arg0, %c0_i32, %c0_i32_0 : i32, i32, i32
  }
  func.func @transform_1(%arg0: i32) -> (i32, i32, i32) {
    %c0_i32 = arith.constant 0 : i32
    %c0_i32_0 = arith.constant 0 : i32
    %c0_i32_1 = arith.constant 0 : i32
    %c0_i32_2 = arith.constant 0 : i32
    return %c0_i32, %c0_i32_0, %c0_i32_1 : i32, i32, i32
  }
  func.func @transform_2(%arg0: i32) -> (i32, i32) {
    %c0_i32 = arith.constant 0 : i32
    %c0_i32_0 = arith.constant 0 : i32
    %c0_i32_1 = arith.constant 0 : i32
    return %c0_i32, %c0_i32_0 : i32, i32
  }
  func.func @transform_3(%arg0: i32) -> (i32, i32, i32) {
    %c0_i32 = arith.constant 0 : i32
    %c0_i32_0 = arith.constant 0 : i32
    %c0_i32_1 = arith.constant 0 : i32
    return %arg0, %c0_i32, %c0_i32_0 : i32, i32, i32
  }
  func.func @transform_4(%arg0: i32) -> (i32, i32) {
    %c0_i32 = arith.constant 0 : i32
    %c0_i32_0 = arith.constant 0 : i32
    %c0_i32_1 = arith.constant 0 : i32
    return %c0_i32, %c0_i32_0 : i32, i32
  }
  func.func @transform_5(%arg0: i32) -> (i32, i32) {
    %c0_i32 = arith.constant 0 : i32
    %c0_i32_0 = arith.constant 0 : i32
    %c0_i32_1 = arith.constant 0 : i32
    return %c0_i32, %c0_i32_0 : i32, i32
  }
}

module attributes {stable_mosaic.version = 11 : i64} {
  func.func @_bn_lrelu_pool_kernel(%arg0: i32, %arg1: memref<1x16x128xf32, #tpu.memory_space<vmem>>, %arg2: memref<1x128xf32, #tpu.memory_space<vmem>>, %arg3: memref<1x128xf32, #tpu.memory_space<vmem>>, %arg4: memref<2x128x64xf32, #tpu.memory_space<vmem>>, %arg5: memref<1x8x64xf32, #tpu.memory_space<vmem>>) attributes {dimension_semantics = [#tpu.dimension_semantics<parallel>], iteration_bounds = array<i64: 2>, scalar_prefetch = 0 : i64, scratch_operands = 0 : i64, tpu.core_type = #tpu.core_type<tc>, window_params = [{transform_indices = @transform_0, window_bounds = array<i64: 1, 16, 128>}, {pipeline_mode = #tpu.pipeline_mode<synchronous>, transform_indices = @transform_1, window_bounds = array<i64: 1, 128>}, {pipeline_mode = #tpu.pipeline_mode<synchronous>, transform_indices = @transform_2, window_bounds = array<i64: 1, 128>}, {pipeline_mode = #tpu.pipeline_mode<synchronous>, transform_indices = @transform_3, window_bounds = array<i64: 2, 128, 64>}, {transform_indices = @transform_4, window_bounds = array<i64: 1, 8, 64>}]} {
    %c0 = arith.constant 0 : index
    %c0_0 = arith.constant 0 : index
    %c0_1 = arith.constant 0 : index
    %0 = vector.load %arg1[%c0, %c0_0, %c0_1] : memref<1x16x128xf32, #tpu.memory_space<vmem>>, vector<1x16x128xf32>
    %1 = vector.shape_cast %0 : vector<1x16x128xf32> to vector<16x128xf32>
    %c0_2 = arith.constant 0 : index
    %c0_3 = arith.constant 0 : index
    %2 = vector.load %arg2[%c0_2, %c0_3] : memref<1x128xf32, #tpu.memory_space<vmem>>, vector<1x128xf32>
    %3 = vector.broadcast %2 : vector<1x128xf32> to vector<16x128xf32>
    %4 = arith.mulf %1, %3 : vector<16x128xf32>
    %c0_4 = arith.constant 0 : index
    %c0_5 = arith.constant 0 : index
    %5 = vector.load %arg3[%c0_4, %c0_5] : memref<1x128xf32, #tpu.memory_space<vmem>>, vector<1x128xf32>
    %6 = vector.broadcast %5 : vector<1x128xf32> to vector<16x128xf32>
    %7 = arith.addf %4, %6 : vector<16x128xf32>
    %cst = arith.constant 0.000000e+00 : f32
    %8 = vector.broadcast %cst : f32 to vector<16x128xf32>
    %9 = arith.cmpf ogt, %7, %8 : vector<16x128xf32>
    %cst_6 = arith.constant 0.00999999977 : f32
    %10 = vector.broadcast %cst_6 : f32 to vector<16x128xf32>
    %11 = arith.mulf %10, %7 : vector<16x128xf32>
    %12 = arith.select %9, %7, %11 : vector<16x128xi1>, vector<16x128xf32>
    %13 = vector.shape_cast %12 : vector<16x128xf32> to vector<8x2x128xf32>
    %cst_7 = arith.constant dense<0xFF800000> : vector<8x128xf32>
    %14 = vector.multi_reduction <maximumf>, %13, %cst_7 [1] : vector<8x2x128xf32> to vector<8x128xf32>
    %c0_8 = arith.constant 0 : index
    %c0_9 = arith.constant 0 : index
    %c0_10 = arith.constant 0 : index
    %15 = vector.load %arg4[%c0_8, %c0_9, %c0_10] : memref<2x128x64xf32, #tpu.memory_space<vmem>>, vector<1x128x64xf32>
    %16 = vector.shape_cast %15 : vector<1x128x64xf32> to vector<128x64xf32>
    %cst_11 = arith.constant dense<0.000000e+00> : vector<8x64xf32>
    %17 = tpu.matmul %14, %16, %cst_11 {dimension_numbers = #tpu.dot_dimension_numbers<[1], [0], [0], [1], [0, 0, 1, 1], [], []>} : vector<8x128xf32>, vector<128x64xf32>, vector<8x64xf32> -> vector<8x64xf32>
    %c1 = arith.constant 1 : index
    %c0_12 = arith.constant 0 : index
    %c0_13 = arith.constant 0 : index
    %18 = vector.load %arg4[%c1, %c0_12, %c0_13] : memref<2x128x64xf32, #tpu.memory_space<vmem>>, vector<1x128x64xf32>
    %19 = vector.shape_cast %18 : vector<1x128x64xf32> to vector<128x64xf32>
    %cst_14 = arith.constant dense<0.000000e+00> : vector<8x64xf32>
    %20 = tpu.matmul %14, %19, %cst_14 {dimension_numbers = #tpu.dot_dimension_numbers<[1], [0], [0], [1], [0, 0, 1, 1], [], []>} : vector<8x128xf32>, vector<128x64xf32>, vector<8x64xf32> -> vector<8x64xf32>
    %21 = arith.maximumf %17, %20 : vector<8x64xf32>
    %c0_15 = arith.constant 0 : index
    %c0_16 = arith.constant 0 : index
    %c0_17 = arith.constant 0 : index
    %22 = vector.load %arg5[%c0_15, %c0_16, %c0_17] : memref<1x8x64xf32, #tpu.memory_space<vmem>>, vector<1x8x64xf32>
    %23 = vector.shape_cast %22 : vector<1x8x64xf32> to vector<8x64xf32>
    %24 = vector.shape_cast %21 : vector<8x64xf32> to vector<1x8x64xf32>
    tpu.vector_store %arg5[%c0_15, %c0_16, %c0_17], %24 {strides = array<i32>} : memref<1x8x64xf32, #tpu.memory_space<vmem>>, vector<1x8x64xf32>,
    return
  }
  func.func @transform_0(%arg0: i32) -> (i32, i32, i32) {
    %c0_i32 = arith.constant 0 : i32
    %c0_i32_0 = arith.constant 0 : i32
    %c0_i32_1 = arith.constant 0 : i32
    return %arg0, %c0_i32, %c0_i32_0 : i32, i32, i32
  }
  func.func @transform_1(%arg0: i32) -> (i32, i32) {
    %c0_i32 = arith.constant 0 : i32
    %c0_i32_0 = arith.constant 0 : i32
    %c0_i32_1 = arith.constant 0 : i32
    return %c0_i32, %c0_i32_0 : i32, i32
  }
  func.func @transform_2(%arg0: i32) -> (i32, i32) {
    %c0_i32 = arith.constant 0 : i32
    %c0_i32_0 = arith.constant 0 : i32
    %c0_i32_1 = arith.constant 0 : i32
    return %c0_i32, %c0_i32_0 : i32, i32
  }
  func.func @transform_3(%arg0: i32) -> (i32, i32, i32) {
    %c0_i32 = arith.constant 0 : i32
    %c0_i32_0 = arith.constant 0 : i32
    %c0_i32_1 = arith.constant 0 : i32
    %c0_i32_2 = arith.constant 0 : i32
    return %c0_i32, %c0_i32_0, %c0_i32_1 : i32, i32, i32
  }
  func.func @transform_4(%arg0: i32) -> (i32, i32, i32) {
    %c0_i32 = arith.constant 0 : i32
    %c0_i32_0 = arith.constant 0 : i32
    %c0_i32_1 = arith.constant 0 : i32
    return %arg0, %c0_i32, %c0_i32_0 : i32, i32, i32
  }
}

</mosaic_0001>

<bundles_post_ra>
// kernel: tile.18
= control target key start
LH: loop header
LB: loop body
LE: loop exit
PB: predicated region body
PF: predicated region fallthrough
CT: control target
= control target key end

     0   :  { %s28_s0 = inlined_call_operand.vmem [shape: f32[8], index: 0, kind: input, shape index: {}]   ;;  %s29_s1 = inlined_call_operand.vmem [shape: f32[16,8], index: 1, kind: output, shape index: {}]  }
   0x1   :  { %v4_v0 = vld [vmem:[%s28_s0] ss:$0 sm:$0xff] }
   0x2   :  { %5 = vst [vmem:[%s29_s1] sm:$0xff] %v4_v0 }
   0x3   :  { %8 = vst [vmem:[%s29_s1 + $0x8] sm:$0xff] %v4_v0 }

// kernel: tile.19
= control target key start
LH: loop header
LB: loop body
LE: loop exit
PB: predicated region body
PF: predicated region fallthrough
CT: control target
= control target key end

     0   :  { %s131_s10 = smov 120   ;;  %s132_s11 = smov 104   ;;  %vm3_vm0 = vcmask 64512   ;;  %vm9_vm1 = vcmask 1048512   ;;  %vm15_vm2 = vcmask 982912   ;;  %vm21_vm3 = vcmask 917312   ;;  %s207_s0 = inlined_call_operand.vmem [shape: f32[16,8], index: 0, kind: input, shape index: {}]   ;;  %s208_s1 = inlined_call_operand.vmem [shape: f32[1,128], index: 1, kind: output, shape index: {}]  }
   0x1   :  { %v101_v0 = vld [vmem:[%s207_s0 + $0xf] sm:$0x1]   ;;  %v103_v1 = vld [vmem:[%s207_s0 + $0xd] sm:$0x1]   ;;  %v105_v2 = vld [vmem:[%s207_s0 + $0xb] sm:$0x1]  }
   0x2   :  { %7 = vrot.lane.b32.xlu0 %v101_v0, %s131_s10  ;;  %19 = vrot.lane.b32.xlu1 %v103_v1, %s132_s11  ;;  %s133_s14 = smov 88   ;;  %v102_v3 = vld [vmem:[%s207_s0 + $0xe] sm:$0x1]   ;;  %v104_v4 = vld [vmem:[%s207_s0 + $0xc] sm:$0x1]   ;;  %s134_s19 = smov 112  }
   0x3   :  { %31 = vrot.lane.b32.xlu2 %v105_v2, %s133_s14  ;;  %s135_s20 = smov 96   ;;  %v106_v5 = vld [vmem:[%s207_s0 + $0xa] sm:$0x1]   ;;  %s136_s23 = smov 80   ;;  %v107_v6 = vld [vmem:[%s207_s0 + $0x9] sm:$0x1]  }
   0x4   :  { %v108_v7 = vld [vmem:[%s207_s0 + $0x8] sm:$0x1]   ;;  %s137_s28 = smov 72   ;;  %s138_s29 = smov 64   ;;  %v109_v8 = vld [vmem:[%s207_s0 + $0x7] sm:$0x1]  }
   0x5   :  { %s139_s3 = smov 56   ;;  %v110_v9 = vld [vmem:[%s207_s0 + $0x6] sm:$0x1]   ;;  %v111_v10 = vld [vmem:[%s207_s0 + $0x5] sm:$0x1]   ;;  %s140_s8 = smov 48  }
   0x6   :  { %s141_s9 = smov 40   ;;  %v112_v11 = vld [vmem:[%s207_s0 + $0x4] sm:$0x1]   ;;  %s142_s12 = smov 32   ;;  %v113_v12 = vld [vmem:[%s207_s0 + $0x3] sm:$0x1]  }
   0x7   :  { %v114_v13 = vld [vmem:[%s207_s0 + $0x2] sm:$0x1]   ;;  %s143_s17 = smov 24   ;;  %s144_s18 = smov 16   ;;  %v115_v14 = vld [vmem:[%s207_s0 + $0x1] sm:$0x1]  }
   0x8   :  { %s145_s21 = smov 8   ;;  %v2_v15 = vld [vmem:[%s207_s0] sm:$0x1]   ;;  %vm27_vm4 = vcmask 851712   ;;  %vm33_vm5 = vcmask 786112   ;;  %vm39_vm6 = vcmask 720512  }
   0x9   :  { %4 = vst.msk [vmem:[#allocation0] sm:$0x1] %vm3_vm0, %v2_v15   ;;  %vm45_vm7 = vcmask 654912   ;;  %vm51_vm8 = vcmask 589312   ;;  %vm57_vm9 = vcmask 523712   ;;  %vm63_vm10 = vcmask 458112  }
   0xa   :  { %13 = vrot.lane.b32.xlu0 %v102_v3, %s134_s19  ;;  %25 = vrot.lane.b32.xlu1 %v104_v4, %s135_s20  ;;  %vm69_vm11 = vcmask 392512   ;;  %vm75_vm12 = vcmask 326912   ;;  %vm81_vm13 = vcmask 261312   ;;  %vm87_vm14 = vcmask 195712  }
   0xb   :  { %37 = vrot.lane.b32.xlu2 %v106_v5, %s136_s23  ;;  %vm93_vm15 = vcmask 130112  }
  0x12   :  { %43 = vrot.lane.b32.xlu0 %v107_v6, %s137_s28  ;;  %49 = vrot.lane.b32.xlu1 %v108_v7, %s138_s29 }
  0x13   :  { %55 = vrot.lane.b32.xlu2 %v109_v8, %s139_s3 }
  0x1a   :  { %61 = vrot.lane.b32.xlu0 %v110_v9, %s140_s8  ;;  %67 = vrot.lane.b32.xlu1 %v111_v10, %s141_s9 }
  0x1b   :  { %73 = vrot.lane.b32.xlu2 %v112_v11, %s142_s12 }
  0x22   :  { %79 = vrot.lane.b32.xlu0 %v113_v12, %s143_s17  ;;  %85 = vrot.lane.b32.xlu1 %v114_v13, %s144_s18 }
  0x23   :  { %91 = vrot.lane.b32.xlu2 %v115_v14, %s145_s21 }
  0x5d   :  { %v32_v16 = vpop.permute.xlu2 %31  }
  0x65   :  { %v38_v17 = vpop.permute.xlu2 %37  }
  0x6d   :  { %v56_v18 = vpop.permute.xlu2 %55  }
  0x74   :  { %v8_v19 = vpop.permute.xlu0 %7   ;;  %v20_v20 = vpop.permute.xlu1 %19  }
  0x75   :  { %10 = vst.msk [vmem:[#allocation0] sm:$0x1] %vm9_vm1, %v8_v19   ;;  %v74_v21 = vpop.permute.xlu2 %73  }
  0x7c   :  { %v14_v22 = vpop.permute.xlu0 %13   ;;  %v26_v23 = vpop.permute.xlu1 %25  }
  0x7d   :  { %16 = vst.msk [vmem:[#allocation0] sm:$0x1] %vm15_vm2, %v14_v22   ;;  %v92_v24 = vpop.permute.xlu2 %91  }
  0x7e   :  { %22 = vst.msk [vmem:[#allocation0] sm:$0x1] %vm21_vm3, %v20_v20  }
  0x7f   :  { %28 = vst.msk [vmem:[#allocation0] sm:$0x1] %vm27_vm4, %v26_v23  }
  0x80   :  { %34 = vst.msk [vmem:[#allocation0] sm:$0x1] %vm33_vm5, %v32_v16  }
  0x81   :  { %40 = vst.msk [vmem:[#allocation0] sm:$0x1] %vm39_vm6, %v38_v17  }
  0x84   :  { %v44_v25 = vpop.permute.xlu0 %43   ;;  %v50_v26 = vpop.permute.xlu1 %49  }
  0x85   :  { %46 = vst.msk [vmem:[#allocation0] sm:$0x1] %vm45_vm7, %v44_v25  }
  0x86   :  { %52 = vst.msk [vmem:[#allocation0] sm:$0x1] %vm51_vm8, %v50_v26  }
  0x87   :  { %58 = vst.msk [vmem:[#allocation0] sm:$0x1] %vm57_vm9, %v56_v18  }
  0x8c   :  { %v62_v27 = vpop.permute.xlu0 %61   ;;  %v68_v28 = vpop.permute.xlu1 %67  }
  0x8d   :  { %64 = vst.msk [vmem:[#allocation0] sm:$0x1] %vm63_vm10, %v62_v27  }
  0x8e   :  { %70 = vst.msk [vmem:[#allocation0] sm:$0x1] %vm69_vm11, %v68_v28  }
  0x8f   :  { %76 = vst.msk [vmem:[#allocation0] sm:$0x1] %vm75_vm12, %v74_v21  }
  0x94   :  { %v80_v29 = vpop.permute.xlu0 %79   ;;  %v86_v30 = vpop.permute.xlu1 %85  }
  0x95   :  { %82 = vst.msk [vmem:[#allocation0] sm:$0x1] %vm81_vm13, %v80_v29  }
  0x96   :  { %88 = vst.msk [vmem:[#allocation0] sm:$0x1] %vm87_vm14, %v86_v30  }
  0x97   :  { %94 = vst.msk [vmem:[#allocation0] sm:$0x1] %vm93_vm15, %v92_v24  }
  0x9e   :  { %v97_v31 = vld [vmem:[#allocation0] sm:$0x1] }
  0x9f   :  { %100 = vst [vmem:[%s208_s1] sm:$0x1] %v97_v31 }

// kernel: down_forward.2
= control target key start
LH: loop header
LB: loop body
LE: loop exit
PB: predicated region body
PF: predicated region fallthrough
CT: control target
= control target key end

     0   :  { %s540_s18 = smov 0   ;;  %s662_s0 = inlined_call_operand.vmem [shape: f32[2,16,64], index: 0, kind: input, shape index: {}]   ;;  %s663_s1 = inlined_call_operand.vmem [shape: f32[3,64,128], index: 1, kind: input, shape index: {}]   ;;  %s664_s2 = inlined_call_operand.vmem [shape: f32[1,128], index: 2, kind: input, shape index: {}]   ;;  %s665_s3 = inlined_call_operand.vmem [shape: f32[2,16,128], index: 3, kind: output, shape index: {0}]   ;;  %s666_s4 = inlined_call_operand.vmem [shape: f32[1,128], index: 4, kind: output, shape index: {1}]   ;;  %s667_s5 = inlined_call_operand.vmem [shape: f32[1,128], index: 5, kind: output, shape index: {2}]  }
   0x1 LB: > { %s546_s19 = sadd.s32 4294967295, %s507_s18   ;;  %p451_p0 = scmp.ge.s32.totalorder %s507_s18, 1  ;;  %s507_s18 = sphi %s540_s18, %s16_s18  }
   0x2   : > { %p182_p1 = scmp.lt.s32.totalorder %s507_s18, 3 }
   0x4   : > { %p183_p2 = pnand %p451_p0, %p182_p1 }
   0x5   : > { %p210_p3 = scmp.lt.s32.totalorder (!%p183_p2), %s546_s19, 1  ;;  %p478_p4 = scmp.ne.s32.totalorder (!%p183_p2), %s546_s19, 0 }
   0x6   : > { %186 = sbr.rel (%p183_p2) target bundleno = 197 (0xc5), region = 32 }
   0xb   : > { %v473_v0 = vld [vmem:[%s663_s1 + $0xb8] sm:$0xff]  ;;  %v472_v2 = vld [vmem:[%s663_s1 + $0xb0] sm:$0xff]  ;;  %v471_v5 = vld [vmem:[%s663_s1 + $0xa8] sm:$0xff]  ;;  %s579_s13 = scalar_select %p210_p3, %s546_s19, 1  ;;  %vm230_vm0 = vcmask 523264   ;;  %vm303_vm1 = vcmask 1040384  }
   0xc   : > { %v465_v1 = vld [vmem:[%s663_s1 + $0x78] sm:$0xff]  ;;  %286 = vmatpush.msra.mxu1 %v473_v0  ;;  %v464_v3 = vld [vmem:[%s663_s1 + $0x70] sm:$0xff]  ;;  %v463_v6 = vld [vmem:[%s663_s1 + $0x68] sm:$0xff]  ;;  %vm335_vm2 = vcmask 1046528  }
   0xd   : > { %318 = vmatpush.msra.mxu2 %v465_v1  ;;  %v229_v4 = vld [vmem:[%s663_s1 + $0x38] sm:$0xff]  ;;  %v228_v7 = vld [vmem:[%s663_s1 + $0x30] sm:$0xff]  ;;  %v227_v8 = vld [vmem:[%s663_s1 + $0x28] sm:$0xff]  ;;  %s481_s28 = sshll.u32 %s579_s13, 4 }
   0xe   : > { %245 = vmatpush.msra.mxu0 %v229_v4  ;;  %483 = vmatpush.msra.mxu3 %v229_v4  ;;  %v470_v9 = vld [vmem:[%s663_s1 + $0xa0] sm:$0xff]  ;;  %v469_v12 = vld [vmem:[%s663_s1 + $0x98] sm:$0xff]  ;;  %v468_v15 = vld [vmem:[%s663_s1 + $0x90] sm:$0xff]  ;;  %s214_s17 = scalar_lea.vmem %s662_s0, %s481_s28  ;;  %s219_s8 = scalar_lea.vmem %s665_s3, %s481_s28 }
   0xf   : > { %287 = vmatpush.msra.mxu1 %v472_v2  ;;  %319 = vmatpush.msra.mxu2 %v464_v3  ;;  %v462_v10 = vld [vmem:[%s663_s1 + $0x60] sm:$0xff]  ;;  %v461_v13 = vld [vmem:[%s663_s1 + $0x58] sm:$0xff]  ;;  %v460_v16 = vld [vmem:[%s663_s1 + $0x50] sm:$0xff] }
  0x10   : > { %246 = vmatpush.msra.mxu0 %v228_v7  ;;  %484 = vmatpush.msra.mxu3 %v228_v7  ;;  %v226_v11 = vld [vmem:[%s663_s1 + $0x20] sm:$0xff]  ;;  %v225_v14 = vld [vmem:[%s663_s1 + $0x18] sm:$0xff]  ;;  %v224_v17 = vld [vmem:[%s663_s1 + $0x10] sm:$0xff] }
  0x11   : > { %288 = vmatpush.msra.mxu1 %v471_v5  ;;  %320 = vmatpush.msra.mxu2 %v463_v6  ;;  %v467_v18 = vld [vmem:[%s663_s1 + $0x88] sm:$0xff]  ;;  %v466_v21 = vld [vmem:[%s663_s1 + $0x80] sm:$0xff] }
  0x12   : > { %247 = vmatpush.msra.mxu0 %v227_v8  ;;  %485 = vmatpush.msra.mxu3 %v227_v8  ;;  %v459_v19 = vld [vmem:[%s663_s1 + $0x48] sm:$0xff]  ;;  %v458_v22 = vld [vmem:[%s663_s1 + $0x40] sm:$0xff] }
  0x13   : > { %289 = vmatpush.msra.mxu1 %v470_v9  ;;  %321 = vmatpush.msra.mxu2 %v462_v10  ;;  %v223_v20 = vld [vmem:[%s663_s1 + $0x8] sm:$0xff]  ;;  %v220_v23 = vld [vmem:[%s214_s17] sm:$0xff] }
  0x14   : > { %248 = vmatpush.msra.mxu0 %v226_v11  ;;  %486 = vmatpush.msra.mxu3 %v226_v11  ;;  %v222_v24 = vld [vmem:[%s663_s1] sm:$0xff]  ;;  %v221_v25 = vld [vmem:[%s214_s17 + $0x8] sm:$0xff] }
  0x15   : > { %290 = vmatpush.msra.mxu1 %v469_v12  ;;  %322 = vmatpush.msra.mxu2 %v461_v13  ;;  %v500_v37 = vld [vmem:[%s664_s2] ss:$0 sm:$0xff] }
  0x16   : > { %249 = vmatpush.msra.mxu0 %v225_v14  ;;  %487 = vmatpush.msra.mxu3 %v225_v14 }
  0x17   : > { %291 = vmatpush.msra.mxu1 %v468_v15  ;;  %323 = vmatpush.msra.mxu2 %v460_v16 }
  0x18   : > { %250 = vmatpush.msra.mxu0 %v224_v17  ;;  %488 = vmatpush.msra.mxu3 %v224_v17 }
  0x19   : > { %292 = vmatpush.msra.mxu1 %v467_v18  ;;  %324 = vmatpush.msra.mxu2 %v459_v19 }
  0x1a   : > { %251 = vmatpush.msra.mxu0 %v223_v20  ;;  %489 = vmatpush.msra.mxu3 %v223_v20 }
  0x1b   : > { %293 = vmatpush.msra.mxu1 %v466_v21  ;;  %325 = vmatpush.msra.mxu2 %v458_v22 }
  0x1c   : > { %474 = vmatmul.msk.f32.vlgmr.msra.gmra.mxu1 %vm230_vm0, %v220_v23  ;;  %476 = vmatmul.msk.f32.vlgmr.msra.gmra.mxu2 %vm230_vm0, %v220_v23 }
  0x1d   : > { %252 = vmatpush.msra.mxu0 %v222_v24  ;;  %490 = vmatpush.msra.mxu3 %v222_v24 }
  0x1e   : > { %456 = vmatmul.msk.f32.vlgmr.msra.gmra.mxu0 %vm230_vm0, %v220_v23  ;;  %457 = vmatmul.msk.f32.vlgmr.msra.gmra.mxu3 %vm230_vm0, %v221_v25 }
  0x24   : > { %475 = vmatmul.msk.f32.gmra.mxu1 %vm230_vm0, %v221_v25  ;;  %477 = vmatmul.msk.f32.gmra.mxu2 %vm230_vm0, %v221_v25 }
  0x99   : > { %v295_v26 = vpop.f32.mrf.mxu1 }
  0x9a   : > { %v336_v33 = vrot.slane %v295_v26, 1 }
  0x9b   : > { %v254_v27 = vpop.f32.mrf.mxu0 }
  0x9c   : > { %v304_v28 = vrot.slane %v254_v27, 7 }
  0x9e   : > { %v309_v30 = vsel %vm303_vm1, 0.0, %v304_v28 }
  0x9f   : > { %v327_v29 = vpop.f32.mrf.mxu2 }
  0xa0   : > { %v328_v36 = vadd.f32 %v327_v29, %v309_v30 }
  0xa1   : > { %v298_v31 = vpop.f32.mrf.mxu1  ;;  %v257_v32 = vpop.f32.mrf.mxu3 }
  0xa2   : > { %v337_v34 = vrot.slane %v298_v31, 1  ;;  %v305_v35 = vrot.slane %v257_v32, 7 }
  0xa4   : > { %v338_v38 = vsel %vm335_vm2, %v336_v33, %v337_v34  ;;  %v306_v40 = vsel %vm303_vm1, %v304_v28, %v305_v35  ;;  %v341_v41 = vsel %vm335_vm2, %v337_v34, 0.0 }
  0xa5   : > { %v342_v39 = vadd.f32 %v338_v38, %v328_v36 }
  0xa7   : > { %v330_v42 = vpop.f32.mrf.mxu2  ;;  %v348_v43 = vadd.f32 %v500_v37, %v342_v39 }
  0xa8   : > { %v331_v44 = vadd.f32 %v330_v42, %v306_v40 }
  0xa9   : > { %350 = vst [vmem:[%s219_s8] sm:$0xff] %v348_v43 }
  0xaa   : > { %v343_v45 = vadd.f32 %v341_v41, %v331_v44  ;;  %355 = sbr.rel (%p478_p4) target bundleno = 178 (0xb2), region = 36 }
  0xac   : > { %v349_v46 = vadd.f32 %v500_v37, %v343_v45 }
  0xae   : > { %351 = vst [vmem:[%s219_s8 + $0x8] sm:$0xff] %v349_v46 }
  0xaf   : > { %v509_v47 = vmov 0.0  }
  0xb0   : > { %356 = vst [vmem:[%s666_s4] sm:$0x1] %v509_v47 }
  0xb1   : > { %357 = vst [vmem:[%s667_s5] sm:$0x1] %v509_v47 }
  0xb2 PF: > { %v359_v48 = vadd.f32 %v349_v46, %v348_v43  ;;  %v369_v49 = vmul.f32 %v348_v43, %v348_v43  ;;  %v370_v50 = vmul.f32 %v349_v46, %v349_v46 }
  0xb4   : > { %v360_v51 = vrot.slane %v359_v48, 4  ;;  %v371_v52 = vadd.f32 %v370_v50, %v369_v49 }
  0xb6   : > { %v361_v53 = vadd.f32 %v360_v51, %v359_v48  ;;  %v372_v54 = vrot.slane %v371_v52, 4 }
  0xb7   : > { %v358_v61 = vld [vmem:[%s666_s4] sm:$0x1] }
  0xb8   : > { %v362_v55 = vrot.slane %v361_v53, 2  ;;  %v373_v56 = vadd.f32 %v372_v54, %v371_v52  ;;  %v368_v0 = vld [vmem:[%s667_s5] sm:$0x1] }
  0xba   : > { %v363_v57 = vadd.f32 %v362_v55, %v361_v53  ;;  %v374_v58 = vrot.slane %v373_v56, 2 }
  0xbc   : > { %v364_v59 = vrot.slane %v363_v57, 1  ;;  %v375_v60 = vadd.f32 %v374_v58, %v373_v56 }
  0xbe   : > { %v365_v62 = vadd.f32 %v364_v59, %v363_v57  ;;  %v376_v63 = vrot.slane %v375_v60, 1 }
  0xc0   : > { %v366_v1 = vadd.f32 %v365_v62, %v358_v61  ;;  %v377_v2 = vadd.f32 %v376_v63, %v375_v60 }
  0xc2   : > { %367 = vst [vmem:[%s666_s4] sm:$0x1] %v366_v1  ;;  %v378_v3 = vadd.f32 %v377_v2, %v368_v0 }
  0xc4   : > { %379 = vst [vmem:[%s667_s5] sm:$0x1] %v378_v3 }
  0xc5 PF: > { %s16_s18 = sadd.s32 1, %s507_s18  }
  0xc6   : > { %p13_p5 = scmp.ge.s32.totalorder %s16_s18, 4  }
  0xc8   :  { %15 = sbr.rel (!%p13_p5) target bundleno = 1 (0x1), region = 84 }

// kernel: down_forward.3
= control target key start
LH: loop header
LB: loop body
LE: loop exit
PB: predicated region body
PF: predicated region fallthrough
CT: control target
= control target key end

     0   :  { %s509_s15 = smov 0   ;;  %s642_s0 = inlined_call_operand.vmem [shape: f32[2,16,128], index: 0, kind: input, shape index: {}]   ;;  %s643_s1 = inlined_call_operand.vmem [shape: f32[1,128], index: 1, kind: input, shape index: {}]   ;;  %s644_s2 = inlined_call_operand.vmem [shape: f32[1,128], index: 2, kind: input, shape index: {}]   ;;  %s645_s3 = inlined_call_operand.vmem [shape: f32[2,128,64], index: 3, kind: input, shape index: {}]   ;;  %s646_s4 = inlined_call_operand.vmem [shape: f32[2,8,64], index: 4, kind: output, shape index: {}]  }
   0x1 LB: > { %s439_s16 = sadd.s32 4294967295, %s482_s15   ;;  %p443_p0 = scmp.ge.s32.totalorder %s482_s15, 1  ;;  %s482_s15 = sphi %s509_s15, %s14_s15  }
   0x2   : > { %p162_p1 = scmp.lt.s32.totalorder %s482_s15, 3 }
   0x4   : > { %p163_p2 = pnand %p443_p0, %p162_p1 }
   0x5   : > { %p187_p3 = scmp.lt.s32.totalorder (!%p163_p2), %s439_s16, 1 }
   0x6   : > { %166 = sbr.rel (%p163_p2) target bundleno = 176 (0xb0), region = 36 }
   0xb   : > { %v302_v0 = vld [vmem:[%s645_s3 + $0x78] sm:$0xff]  ;;  %v301_v2 = vld [vmem:[%s645_s3 + $0x70] sm:$0xff]  ;;  %v300_v4 = vld [vmem:[%s645_s3 + $0x68] sm:$0xff]  ;;  %s648_s16 = smov (!%p187_p3, %s439_s16), 1  ;;  %vm230_vm2 = vcmask 1041408   ;;  %vm311_vm3 = vcmask 1041409  }
   0xc   : > { %v462_v1 = vld [vmem:[%s645_s3 + $0xf8] sm:$0xff]  ;;  %326 = vmatpush.msra.mxu0 %v302_v0  ;;  %v461_v3 = vld [vmem:[%s645_s3 + $0xf0] sm:$0xff]  ;;  %v460_v5 = vld [vmem:[%s645_s3 + $0xe8] sm:$0xff]  ;;  %s465_s7 = sshll.u32 %s648_s16, 4  ;;  %vm313_vm4 = vcmask 1042434   ;;  %vm315_vm5 = vcmask 1043459  }
   0xd   : > { %363 = vmatpush.msra.mxu1 %v462_v1  ;;  %v299_v6 = vld [vmem:[%s645_s3 + $0x60] sm:$0xff]  ;;  %v298_v8 = vld [vmem:[%s645_s3 + $0x58] sm:$0xff]  ;;  %s191_s14 = scalar_lea.vmem %s642_s0, %s465_s7  ;;  %v297_v10 = vld [vmem:[%s645_s3 + $0x50] sm:$0xff]  ;;  %vm317_vm6 = vcmask 1044484   ;;  %vm319_vm7 = vcmask 1045509   ;;  %vm321_vm8 = vcmask 1046534  }
   0xe   : > { %327 = vmatpush.msra.mxu0 %v301_v2  ;;  %v459_v7 = vld [vmem:[%s645_s3 + $0xe0] sm:$0xff]  ;;  %v458_v9 = vld [vmem:[%s645_s3 + $0xd8] sm:$0xff]  ;;  %v457_v11 = vld [vmem:[%s645_s3 + $0xd0] sm:$0xff]  ;;  %vm323_vm9 = vcmask 1047559   ;;  %s446_s17 = sshll.u32 %s648_s16, 3  ;;  %vm384_vm10 = vcmask 523264  }
   0xf   : > { %364 = vmatpush.msra.mxu1 %v461_v3  ;;  %v296_v12 = vld [vmem:[%s645_s3 + $0x48] sm:$0xff]  ;;  %v295_v14 = vld [vmem:[%s645_s3 + $0x40] sm:$0xff]  ;;  %v294_v22 = vld [vmem:[%s645_s3 + $0x38] sm:$0xff]  ;;  %s195_s20 = scalar_lea.vmem %s646_s4, %s446_s17 }
  0x10   : > { %328 = vmatpush.msra.mxu0 %v300_v4  ;;  %v456_v13 = vld [vmem:[%s645_s3 + $0xc8] sm:$0xff]  ;;  %v196_v15 = vld [vmem:[%s191_s14] sm:$0xff]  ;;  %v454_v23 = vld [vmem:[%s645_s3 + $0xb8] sm:$0xff] }
  0x11   : > { %365 = vmatpush.msra.mxu1 %v460_v5  ;;  %v197_v16 = vld [vmem:[%s191_s14 + $0x8] sm:$0xff]  ;;  %v474_v17 = vld [vmem:[%s643_s1] ss:$0 sm:$0xff]  ;;  %v293_v26 = vld [vmem:[%s645_s3 + $0x30] sm:$0xff] }
  0x12   : > { %329 = vmatpush.msra.mxu0 %v299_v6  ;;  %v455_v18 = vld [vmem:[%s645_s3 + $0xc0] sm:$0xff]  ;;  %v202_v20 = vmul.f32 %v474_v17, %v196_v15  ;;  %v203_v21 = vmul.f32 %v474_v17, %v197_v16  ;;  %v453_v27 = vld [vmem:[%s645_s3 + $0xb0] sm:$0xff]  ;;  %v292_v30 = vld [vmem:[%s645_s3 + $0x28] sm:$0xff] }
  0x13   : > { %366 = vmatpush.msra.mxu1 %v459_v7  ;;  %v475_v19 = vld [vmem:[%s644_s2] ss:$0 sm:$0xff]  ;;  %v452_v31 = vld [vmem:[%s645_s3 + $0xa8] sm:$0xff]  ;;  %v290_v44 = vld [vmem:[%s645_s3 + $0x18] sm:$0xff] }
  0x14   : > { %330 = vmatpush.msra.mxu0 %v298_v8  ;;  %v208_v24 = vadd.f32 %v475_v19, %v202_v20  ;;  %v209_v25 = vadd.f32 %v475_v19, %v203_v21  ;;  %v291_v34 = vld [vmem:[%s645_s3 + $0x20] sm:$0xff]  ;;  %v450_v45 = vld [vmem:[%s645_s3 + $0x98] sm:$0xff]  ;;  %v289_v54 = vld [vmem:[%s645_s3 + $0x10] sm:$0xff] }
  0x15   : > { %367 = vmatpush.msra.mxu1 %v458_v9  ;;  %v451_v35 = vld [vmem:[%s645_s3 + $0xa0] sm:$0xff]  ;;  %v449_v55 = vld [vmem:[%s645_s3 + $0x90] sm:$0xff]  ;;  %v288_v0 = vld [vmem:[%s645_s3 + $0x8] sm:$0xff] }
  0x16   : > { %331 = vmatpush.msra.mxu0 %v297_v10  ;;  %vm210_vm0 = vcmp.gt.f32.partialorder %v208_v24, 0.0  ;;  %vm211_vm1 = vcmp.gt.f32.partialorder %v209_v25, 0.0  ;;  %v212_v28 = vmul.f32 0.01, %v208_v24  ;;  %v213_v29 = vmul.f32 0.01, %v209_v25 }
  0x17   : > { %368 = vmatpush.msra.mxu1 %v457_v11  ;;  %v448_v1 = vld [vmem:[%s645_s3 + $0x88] sm:$0xff]  ;;  %v287_v10 = vld [vmem:[%s645_s3] sm:$0xff] }
  0x18   : > { %332 = vmatpush.msra.mxu0 %v296_v12  ;;  %v214_v32 = vsel %vm210_vm0, %v208_v24, %v212_v28  ;;  %v215_v33 = vsel %vm211_vm1, %v209_v25, %v213_v29  ;;  %v447_v11 = vld [vmem:[%s645_s3 + $0x80] sm:$0xff] }
  0x19   : > { %369 = vmatpush.msra.mxu1 %v456_v13  ;;  %v218_v36 = vrot.slane %v214_v32, 2  ;;  %v219_v37 = vrot.slane %v214_v32, 4  ;;  %v220_v38 = vrot.slane %v214_v32, 6  ;;  %v221_v39 = vrot.slane %v215_v33, 2 }
  0x1a   : > { %333 = vmatpush.msra.mxu0 %v295_v14  ;;  %v222_v40 = vrot.slane %v215_v33, 4  ;;  %v223_v41 = vrot.slane %v215_v33, 6  ;;  %v231_v42 = vsel %vm230_vm2, %v214_v32, -inf  ;;  %v259_v43 = vsel %vm230_vm2, %v215_v33, -inf }
  0x1b   : > { %370 = vmatpush.msra.mxu1 %v455_v18  ;;  %v232_v46 = vrot.slane %v231_v42, 4  ;;  %v238_v47 = vsel %vm230_vm2, %v218_v36, -inf  ;;  %v245_v48 = vsel %vm230_vm2, %v219_v37, -inf  ;;  %v252_v49 = vsel %vm230_vm2, %v220_v38, -inf }
  0x1c   : > { %334 = vmatpush.msra.mxu0 %v294_v22  ;;  %v239_v50 = vrot.slane %v238_v47, 4  ;;  %v246_v51 = vrot.slane %v245_v48, 4  ;;  %v253_v52 = vrot.slane %v252_v49, 4  ;;  %v260_v53 = vrot.slane %v259_v43, 4 }
  0x1d   : > { %371 = vmatpush.msra.mxu1 %v454_v23  ;;  %v233_v56 = vmax.f32 %v231_v42, %v232_v46  ;;  %v266_v57 = vsel %vm230_vm2, %v221_v39, -inf  ;;  %v273_v58 = vsel %vm230_vm2, %v222_v40, -inf  ;;  %v280_v59 = vsel %vm230_vm2, %v223_v41, -inf }
  0x1e   : > { %335 = vmatpush.msra.mxu0 %v293_v26  ;;  %v240_v60 = vmax.f32 %v238_v47, %v239_v50  ;;  %v247_v61 = vmax.f32 %v245_v48, %v246_v51  ;;  %v254_v62 = vmax.f32 %v252_v49, %v253_v52  ;;  %v267_v63 = vrot.slane %v266_v57, 4 }
  0x1f   : > { %372 = vmatpush.msra.mxu1 %v453_v27  ;;  %v234_v2 = vrot.slane %v233_v56, 2  ;;  %v261_v3 = vmax.f32 %v259_v43, %v260_v53  ;;  %v274_v4 = vrot.slane %v273_v58, 4  ;;  %v281_v5 = vrot.slane %v280_v59, 4 }
  0x20   : > { %336 = vmatpush.msra.mxu0 %v292_v30  ;;  %v241_v6 = vrot.slane %v240_v60, 2  ;;  %v248_v7 = vrot.slane %v247_v61, 2  ;;  %v255_v8 = vrot.slane %v254_v62, 2  ;;  %v268_v9 = vmax.f32 %v266_v57, %v267_v63 }
  0x21   : > { %373 = vmatpush.msra.mxu1 %v452_v31  ;;  %v235_v12 = vmax.f32 %v233_v56, %v234_v2  ;;  %v262_v13 = vrot.slane %v261_v3, 2  ;;  %v275_v14 = vmax.f32 %v273_v58, %v274_v4  ;;  %v282_v15 = vmax.f32 %v280_v59, %v281_v5 }
  0x22   : > { %337 = vmatpush.msra.mxu0 %v291_v34  ;;  %v242_v16 = vmax.f32 %v240_v60, %v241_v6  ;;  %v249_v17 = vmax.f32 %v247_v61, %v248_v7  ;;  %v256_v18 = vmax.f32 %v254_v62, %v255_v8  ;;  %v269_v19 = vrot.slane %v268_v9, 2 }
  0x23   : > { %374 = vmatpush.msra.mxu1 %v451_v35  ;;  %v236_v20 = vrot.slane %v235_v12, 1  ;;  %v263_v21 = vmax.f32 %v261_v3, %v262_v13  ;;  %v276_v22 = vrot.slane %v275_v14, 2  ;;  %v283_v23 = vrot.slane %v282_v15, 2 }
  0x24   : > { %338 = vmatpush.msra.mxu0 %v290_v44  ;;  %v243_v24 = vrot.slane %v242_v16, 1  ;;  %v250_v25 = vrot.slane %v249_v17, 1  ;;  %v257_v26 = vrot.slane %v256_v18, 1  ;;  %v270_v27 = vmax.f32 %v268_v9, %v269_v19 }
  0x25   : > { %375 = vmatpush.msra.mxu1 %v450_v45  ;;  %v237_v28 = vmax.f32 %v235_v12, %v236_v20  ;;  %v264_v29 = vrot.slane %v263_v21, 1  ;;  %v277_v30 = vmax.f32 %v275_v14, %v276_v22  ;;  %v284_v31 = vmax.f32 %v282_v15, %v283_v23 }
  0x26   : > { %339 = vmatpush.msra.mxu0 %v289_v54  ;;  %v244_v32 = vmax.f32 %v242_v16, %v243_v24  ;;  %v251_v33 = vmax.f32 %v249_v17, %v250_v25  ;;  %v258_v34 = vmax.f32 %v256_v18, %v257_v26  ;;  %v271_v35 = vrot.slane %v270_v27, 1 }
  0x27   : > { %376 = vmatpush.msra.mxu1 %v449_v55  ;;  %v265_v36 = vmax.f32 %v263_v21, %v264_v29  ;;  %v278_v37 = vrot.slane %v277_v30, 1  ;;  %v285_v38 = vrot.slane %v284_v31, 1 }
  0x28   : > { %340 = vmatpush.msra.mxu0 %v288_v0  ;;  %v272_v39 = vmax.f32 %v270_v27, %v271_v35  ;;  %v312_v40 = vsel %vm311_vm3, %v244_v32, %v237_v28 }
  0x29   : > { %377 = vmatpush.msra.mxu1 %v448_v1  ;;  %v279_v41 = vmax.f32 %v277_v30, %v278_v37  ;;  %v314_v42 = vsel %vm313_vm4, %v251_v33, %v312_v40  ;;  %v286_v43 = vmax.f32 %v284_v31, %v285_v38 }
  0x2a   : > { %341 = vmatpush.msra.mxu0 %v287_v10  ;;  %v316_v44 = vsel %vm315_vm5, %v258_v34, %v314_v42 }
  0x2b   : > { %378 = vmatpush.msra.mxu1 %v447_v11  ;;  %v318_v45 = vsel %vm317_vm6, %v265_v36, %v316_v44 }
  0x2c   : > { %v320_v46 = vsel %vm319_vm7, %v272_v39, %v318_v45 }
  0x2d   : > { %v322_v47 = vsel %vm321_vm8, %v279_v41, %v320_v46 }
  0x2e   : > { %v324_v48 = vsel %vm323_vm9, %v286_v43, %v322_v47 }
  0x2f   : > { %342 = vmatmul.f32.vlgmr.msra.gmra.mxu0 %v324_v48  ;;  %379 = vmatmul.f32.vlgmr.msra.gmra.mxu1 %v324_v48 }
  0xac   : > { %v343_v49 = vpop.f32.mrf.mxu0  ;;  %v380_v50 = vpop.f32.mrf.mxu1 }
  0xad   : > { %v383_v51 = vmax.f32 %v343_v49, %v380_v50 }
  0xaf   : > { %385 = vst.msk [vmem:[%s195_s20] sm:$0xff] %vm384_vm10, %v383_v51 }
  0xb0 PF: > { %s14_s15 = sadd.s32 1, %s482_s15  }
  0xb1   : > { %p11_p4 = scmp.ge.s32.totalorder %s14_s15, 4  }
  0xb3   :  { %13 = sbr.rel (!%p11_p4) target bundleno = 1 (0x1), region = 67 }

</bundles_post_ra>
